<compile_context>
chip_gen: v7x
topology: tpu7x:2x2x1
jax: 0.10.0
libtpu: 0.0.40
codegen_flags: <defaults>
</compile_context>

<pallas_src>
import numpy as np

import jax
import jax.numpy as jnp
from jax.experimental import pallas as pl
from jax.experimental.pallas import tpu as pltpu

_LANE = 128


def _round_up(v, m):
    return ((v + m - 1) // m) * m


def _cdiv(a, b):
    return (a + b - 1) // b


def _node_kernel(x_ref, thr_ref, leaf_mat_ref, cmp_ref, resp_ref, out_ref):
    """One (batch-tile, tree-block) grid step.

    x_ref   : (1, tb, tdb)  f32   gathered feature values for this tree block
    thr_ref : (1, 1, tdb)   f32   per-(tree, depth) thresholds (+1e30 on padding)
    leaf_mat: (tdb, tlb)    bf16  ±1 leaf bit codes (0 on padding); identical per block
    cmp_ref : (1, tlb)      f32   popcount(leaf) - 0.5 (+1e30 on padded columns)
    resp_ref: (1, tlb, Cp)  f32   responses / num_trees (0 on padding)
    out_ref : (tb, Cp)      f32   accumulated across the tree-block axis
    """
    @pl.when(pl.program_id(1) == 0)
    def _init():
        out_ref[...] = jnp.zeros_like(out_ref)

    # Threshold bits (strict '>' as in the PyTorch module); exact 0/1 in bf16.
    bits = (x_ref[0] > thr_ref[0]).astype(jnp.bfloat16)                    # (tb, tdb)

    # Matching-bit "score" per (tree, leaf): bf16 MXU matmul, f32 accumulate.
    # Values are exact small integers, so the compare below is exact.
    match = jnp.dot(bits, leaf_mat_ref[...],
                    preferred_element_type=jnp.float32)                    # (tb, tlb)

    # Leaf hit  <=>  match > popcount(leaf) - 0.5  (leaf bias folded into cmp_ref).
    one_hot = (match > cmp_ref[...]).astype(jnp.float32)                   # (tb, tlb)

    # Leaf gather + sum over this tree block as ONE matmul (1/num_trees pre-folded).
    out_ref[...] += jnp.dot(one_hot, resp_ref[0],
                            preferred_element_type=jnp.float32)            # (tb, Cp)


def advanced_node_forward(x, feature_weights, thresholds, responses):
    """x: (B, F); feature_weights: (T, depth, F); thresholds: (T, depth);
    responses: (T, 2**depth, C).  Returns (B, C) float32 (eval-mode forward)."""
    num_trees, depth, _ = feature_weights.shape
    leaves, num_classes = responses.shape[1], responses.shape[2]
    batch = x.shape[0]

    # ---- Tree blocking: tlb (= trees_per_block*leaves, padded) is the MXU N dim. ----
    trees_per_block = max(1, min(num_trees, max(1, 256 // leaves)))
    n_blocks = _cdiv(num_trees, trees_per_block)
    t_pad = n_blocks * trees_per_block
    tdb = _round_up(trees_per_block * depth, _LANE)     # decision slots per block
    tlb = _round_up(trees_per_block * leaves, _LANE)    # leaf slots per block
    cp = _round_up(num_classes, _LANE)                  # lane-dense class dim

    # ---- Batch tiling: multiple of 8, always >= 2 tiles (v7x dual-TC). ----
    if batch >= 1024:
        tb = 512                      # big tiles amortize per-step overhead (v6e headroom)
    elif batch >= 512:
        tb = 256
    else:
        tb = max(8, _round_up(_cdiv(batch, 2), 8))      # aim for exactly 2 tiles
    b_p = max(_round_up(batch, tb), 2 * tb)
    n_batch_tiles = b_p // tb

    # ---- Wrapper-side feature gather (replaces the in-kernel selection matmul). ----
    feat_idx = jnp.argmax(feature_weights, axis=-1).reshape(-1)            # (T*depth,)
    sel = x.astype(jnp.float32)[:, feat_idx]                               # (B, T*depth)
    sel = jnp.pad(sel, ((0, b_p - batch), (0, (t_pad - num_trees) * depth)))
    sel = sel.reshape(b_p, n_blocks, trees_per_block * depth)
    sel = jnp.pad(sel, ((0, 0), (0, 0), (0, tdb - trees_per_block * depth)))
    sel_blk = jnp.transpose(sel, (1, 0, 2))                                # (nb, B_p, tdb)

    thr = thresholds.astype(jnp.float32).reshape(-1)                       # (T*depth,)
    thr = jnp.pad(thr, (0, (t_pad - num_trees) * depth), constant_values=1e30)
    thr = thr.reshape(n_blocks, trees_per_block * depth)
    thr = jnp.pad(thr, ((0, 0), (0, tdb - trees_per_block * depth)),
                  constant_values=1e30)
    thr_blk = thr.reshape(n_blocks, 1, tdb)                                # (nb, 1, tdb)

    # ---- Leaf bit-code table + folded compare threshold (identical for all blocks). ----
    leaf_mat_np = np.zeros((tdb, tlb), np.float32)
    cmp_np = np.full((1, tlb), 1e30, np.float32)       # padded columns never fire
    for t in range(trees_per_block):
        for l in range(leaves):
            j = t * leaves + l
            for d in range(depth):
                bit = (l >> (depth - 1 - d)) & 1
                leaf_mat_np[t * depth + d, j] = 2.0 * bit - 1.0
            cmp_np[0, j] = bin(l).count("1") - 0.5
    leaf_mat = jnp.asarray(leaf_mat_np, dtype=jnp.bfloat16)  # exact ±1/0 in bf16
    cmp_thr = jnp.asarray(cmp_np)

    # ---- Responses: fold 1/num_trees, zero-pad trees/leaves/classes. ----
    resp = responses.astype(jnp.float32) * (1.0 / num_trees)               # (T, L, C)
    resp = jnp.pad(resp, ((0, t_pad - num_trees), (0, 0), (0, 0)))
    resp = resp.reshape(n_blocks, trees_per_block * leaves, num_classes)
    resp_blk = jnp.pad(resp, ((0, 0), (0, tlb - trees_per_block * leaves),
                              (0, cp - num_classes)))                      # (nb, tlb, Cp)

    grid = (n_batch_tiles, n_blocks)   # reduction (tree-block) axis last / innermost

    # ---- VMEM budget + cost estimate. ----
    blk_bytes = tb * tdb * 4 + tdb * 4 + tlb * cp * 4 + tb * cp * 4        # pipelined blocks
    const_bytes = tdb * tlb * 2 + tlb * 4                                  # leaf_mat + cmp
    inter_bytes = 2 * tb * tlb * 4 + tb * tdb * 2 + tb * cp * 4            # in-kernel temps
    vmem_limit = int(min(max(2 * (blk_bytes + const_bytes) + inter_bytes + (4 << 20),
                             32 << 20), 64 << 20))
    cost = pl.CostEstimate(
        flops=int(2 * b_p * n_blocks * (tdb * tlb + tlb * cp)),
        transcendentals=0,
        bytes_accessed=int(sel_blk.size * 4 + thr_blk.size * 4 + leaf_mat.size * 2
                           + cmp_thr.size * 4 + resp_blk.size * 4 + b_p * cp * 4),
    )
    compiler_params = pltpu.CompilerParams(
        dimension_semantics=("parallel", "arbitrary"),
        vmem_limit_bytes=vmem_limit,
    )

    def _call(single_buffer_consts):
        const_kw = {}
        if single_buffer_consts:
            # Grid-invariant params do not need double buffering (halves their VMEM).
            const_kw = dict(pipeline_mode=pl.Buffered(buffer_count=1))
        in_specs = [
            pl.BlockSpec((1, tb, tdb), lambda b, t: (t, b, 0)),            # gathered x
            pl.BlockSpec((1, 1, tdb), lambda b, t: (t, 0, 0)),             # thresholds
            pl.BlockSpec((tdb, tlb), lambda b, t: (0, 0), **const_kw),     # leaf codes
            pl.BlockSpec((1, tlb), lambda b, t: (0, 0), **const_kw),       # compare thr
            pl.BlockSpec((1, tlb, cp), lambda b, t: (t, 0, 0)),            # responses
        ]
        return pl.pallas_call(
            _node_kernel,
            out_shape=jax.ShapeDtypeStruct((b_p, cp), jnp.float32),
            grid=grid,
            in_specs=in_specs,
            out_specs=pl.BlockSpec((tb, cp), lambda b, t: (b, 0)),
            compiler_params=compiler_params,
            cost_estimate=cost,
        )(sel_blk, thr_blk, leaf_mat, cmp_thr, resp_blk)

    try:
        out_padded = _call(True)
    except Exception:  # JAX version without Buffered(1) support on pallas_call specs
        out_padded = _call(False)

    return out_padded[:batch, :num_classes]


def reference_forward(x, feature_weights, thresholds, responses):
    """Pure-JAX reference mirroring the PyTorch loops (eval-mode dropout)."""
    num_trees, depth, _ = feature_weights.shape
    num_classes = responses.shape[2]
    outputs = jnp.zeros((x.shape[0], num_classes), dtype=jnp.float32)
    for t in range(num_trees):
        decision = jnp.zeros((x.shape[0],), dtype=jnp.float32)
        for d in range(depth):
            fidx = jnp.argmax(feature_weights[t, d])
            bit = (x[:, fidx] > thresholds[t, d]).astype(jnp.float32)
            decision = decision * 2.0 + bit
        outputs = outputs + responses[t][decision.astype(jnp.int32)]
    return outputs / num_trees


if __name__ == "__main__":
    # Small shapes consistent with the module.
    batch = 8
    num_features = 16
    num_classes = 4
    depth = 3
    num_trees = 5

    key = jax.random.PRNGKey(0)
    k_x, k_fw, k_th, k_rs = jax.random.split(key, 4)

    x = jax.random.normal(k_x, (batch, num_features), dtype=jnp.float32)
    feature_weights = jax.random.normal(
        k_fw, (num_trees, depth, num_features), dtype=jnp.float32
    )
    thresholds = jax.random.normal(k_th, (num_trees, depth), dtype=jnp.float32)
    responses = jax.random.normal(
        k_rs, (num_trees, 2 ** depth, num_classes), dtype=jnp.float32
    )

    out = advanced_node_forward(x, feature_weights, thresholds, responses)
    out = jax.block_until_ready(out)

    ref = reference_forward(x, feature_weights, thresholds, responses)
    np.testing.assert_allclose(np.asarray(out), np.asarray(ref), rtol=1e-5, atol=1e-5)

    print("KERNEL_OK")
</pallas_src>

<mosaic_0001>
module attributes {stable_mosaic.version = 11 : i64} {
  func.func @_node_kernel(%arg0: i32, %arg1: i32, %arg2: memref<1x8x128xf32, #tpu.memory_space<vmem>>, %arg3: memref<1x1x128xf32, #tpu.memory_space<vmem>>, %arg4: memref<128x128xbf16, #tpu.memory_space<vmem>>, %arg5: memref<1x128xf32, #tpu.memory_space<vmem>>, %arg6: memref<1x128x128xf32, #tpu.memory_space<vmem>>, %arg7: memref<8x128xf32, #tpu.memory_space<vmem>>) attributes {dimension_semantics = [#tpu.dimension_semantics<parallel>, #tpu.dimension_semantics<arbitrary>], iteration_bounds = array<i64: 2, 1>, scalar_prefetch = 0 : i64, scratch_operands = 0 : i64, tpu.core_type = #tpu.core_type<tc>, window_params = [{transform_indices = @transform_0, window_bounds = array<i64: 1, 8, 128>}, {transform_indices = @transform_1, window_bounds = array<i64: 1, 1, 128>}, {pipeline_mode = #tpu.pipeline_mode<synchronous>, transform_indices = @transform_2, window_bounds = array<i64: 128, 128>}, {pipeline_mode = #tpu.pipeline_mode<synchronous>, transform_indices = @transform_3, window_bounds = array<i64: 1, 128>}, {transform_indices = @transform_4, window_bounds = array<i64: 1, 128, 128>}, {transform_indices = @transform_5, window_bounds = array<i64: 8, 128>}]} {
    %c0_i32 = arith.constant 0 : i32
    %0 = arith.cmpi eq, %arg1, %c0_i32 : i32
    %1 = arith.extui %0 : i1 to i32
    %c0_i32_0 = arith.constant 0 : i32
    %2 = arith.cmpi ne, %1, %c0_i32_0 : i32
    scf.if %2 {
      %cst_18 = arith.constant 0.000000e+00 : f32
      %25 = vector.broadcast %cst_18 : f32 to vector<8x128xf32>
      %c0_19 = arith.constant 0 : index
      %c0_20 = arith.constant 0 : index
      %26 = vector.load %arg7[%c0_19, %c0_20] : memref<8x128xf32, #tpu.memory_space<vmem>>, vector<8x128xf32>
      tpu.vector_store %arg7[%c0_19, %c0_20], %25 {strides = array<i32>} : memref<8x128xf32, #tpu.memory_space<vmem>>, vector<8x128xf32>,
    } else {
    }
    %c0 = arith.constant 0 : index
    %c0_1 = arith.constant 0 : index
    %c0_2 = arith.constant 0 : index
    %3 = vector.load %arg2[%c0, %c0_1, %c0_2] : memref<1x8x128xf32, #tpu.memory_space<vmem>>, vector<1x8x128xf32>
    %4 = vector.shape_cast %3 : vector<1x8x128xf32> to vector<8x128xf32>
    %c0_3 = arith.constant 0 : index
    %c0_4 = arith.constant 0 : index
    %c0_5 = arith.constant 0 : index
    %5 = vector.load %arg3[%c0_3, %c0_4, %c0_5] : memref<1x1x128xf32, #tpu.memory_space<vmem>>, vector<1x1x128xf32>
    %6 = vector.shape_cast %5 : vector<1x1x128xf32> to vector<1x128xf32>
    %7 = vector.broadcast %6 : vector<1x128xf32> to vector<8x128xf32>
    %8 = arith.cmpf ogt, %4, %7 : vector<8x128xf32>
    %9 = arith.extui %8 : vector<8x128xi1> to vector<8x128xi32>
    %10 = arith.sitofp %9 : vector<8x128xi32> to vector<8x128xf32>
    %11 = arith.truncf %10 : vector<8x128xf32> to vector<8x128xbf16>
    %c0_6 = arith.constant 0 : index
    %c0_7 = arith.constant 0 : index
    %12 = vector.load %arg4[%c0_6, %c0_7] : memref<128x128xbf16, #tpu.memory_space<vmem>>, vector<128x128xbf16>
    %cst = arith.constant dense<0.000000e+00> : vector<8x128xf32>
    %13 = tpu.matmul %11, %12, %cst {dimension_numbers = #tpu.dot_dimension_numbers<[1], [0], [0], [1], [0, 0, 1, 1], [], []>} : vector<8x128xbf16>, vector<128x128xbf16>, vector<8x128xf32> -> vector<8x128xf32>
    %c0_8 = arith.constant 0 : index
    %c0_9 = arith.constant 0 : index
    %14 = vector.load %arg5[%c0_8, %c0_9] : memref<1x128xf32, #tpu.memory_space<vmem>>, vector<1x128xf32>
    %15 = vector.broadcast %14 : vector<1x128xf32> to vector<8x128xf32>
    %16 = arith.cmpf ogt, %13, %15 : vector<8x128xf32>
    %17 = arith.extui %16 : vector<8x128xi1> to vector<8x128xi32>
    %18 = arith.sitofp %17 : vector<8x128xi32> to vector<8x128xf32>
    %c0_10 = arith.constant 0 : index
    %c0_11 = arith.constant 0 : index
    %19 = vector.load %arg7[%c0_10, %c0_11] : memref<8x128xf32, #tpu.memory_space<vmem>>, vector<8x128xf32>
    %c0_12 = arith.constant 0 : index
    %c0_13 = arith.constant 0 : index
    %c0_14 = arith.constant 0 : index
    %20 = vector.load %arg6[%c0_12, %c0_13, %c0_14] : memref<1x128x128xf32, #tpu.memory_space<vmem>>, vector<1x128x128xf32>
    %21 = vector.shape_cast %20 : vector<1x128x128xf32> to vector<128x128xf32>
    %cst_15 = arith.constant dense<0.000000e+00> : vector<8x128xf32>
    %22 = tpu.matmul %18, %21, %cst_15 {dimension_numbers = #tpu.dot_dimension_numbers<[1], [0], [0], [1], [0, 0, 1, 1], [], []>} : vector<8x128xf32>, vector<128x128xf32>, vector<8x128xf32> -> vector<8x128xf32>
    %23 = arith.addf %19, %22 : vector<8x128xf32>
    %c0_16 = arith.constant 0 : index
    %c0_17 = arith.constant 0 : index
    %24 = vector.load %arg7[%c0_16, %c0_17] : memref<8x128xf32, #tpu.memory_space<vmem>>, vector<8x128xf32>
    tpu.vector_store %arg7[%c0_16, %c0_17], %23 {strides = array<i32>} : memref<8x128xf32, #tpu.memory_space<vmem>>, vector<8x128xf32>,
    return
  }
  func.func @transform_0(%arg0: i32, %arg1: i32) -> (i32, i32, i32) {
    %c0_i32 = arith.constant 0 : i32
    %c0_i32_0 = arith.constant 0 : i32
    return %arg1, %arg0, %c0_i32 : i32, i32, i32
  }
  func.func @transform_1(%arg0: i32, %arg1: i32) -> (i32, i32, i32) {
    %c0_i32 = arith.constant 0 : i32
    %c0_i32_0 = arith.constant 0 : i32
    %c0_i32_1 = arith.constant 0 : i32
    return %arg1, %c0_i32, %c0_i32_0 : i32, i32, i32
  }
  func.func @transform_2(%arg0: i32, %arg1: i32) -> (i32, i32) {
    %c0_i32 = arith.constant 0 : i32
    %c0_i32_0 = arith.constant 0 : i32
    %c0_i32_1 = arith.constant 0 : i32
    return %c0_i32, %c0_i32_0 : i32, i32
  }
  func.func @transform_3(%arg0: i32, %arg1: i32) -> (i32, i32) {
    %c0_i32 = arith.constant 0 : i32
    %c0_i32_0 = arith.constant 0 : i32
    %c0_i32_1 = arith.constant 0 : i32
    return %c0_i32, %c0_i32_0 : i32, i32
  }
  func.func @transform_4(%arg0: i32, %arg1: i32) -> (i32, i32, i32) {
    %c0_i32 = arith.constant 0 : i32
    %c0_i32_0 = arith.constant 0 : i32
    %c0_i32_1 = arith.constant 0 : i32
    return %arg1, %c0_i32, %c0_i32_0 : i32, i32, i32
  }
  func.func @transform_5(%arg0: i32, %arg1: i32) -> (i32, i32) {
    %c0_i32 = arith.constant 0 : i32
    %c0_i32_0 = arith.constant 0 : i32
    return %arg0, %c0_i32 : i32, i32
  }
}

module attributes {stable_mosaic.version = 11 : i64} {
  func.func @_node_kernel(%arg0: i32, %arg1: i32, %arg2: memref<1x8x128xf32, #tpu.memory_space<vmem>>, %arg3: memref<1x1x128xf32, #tpu.memory_space<vmem>>, %arg4: memref<128x128xbf16, #tpu.memory_space<vmem>>, %arg5: memref<1x128xf32, #tpu.memory_space<vmem>>, %arg6: memref<1x128x128xf32, #tpu.memory_space<vmem>>, %arg7: memref<8x128xf32, #tpu.memory_space<vmem>>) attributes {dimension_semantics = [#tpu.dimension_semantics<parallel>, #tpu.dimension_semantics<arbitrary>], iteration_bounds = array<i64: 2, 1>, scalar_prefetch = 0 : i64, scratch_operands = 0 : i64, tpu.core_type = #tpu.core_type<tc>, window_params = [{transform_indices = @transform_0, window_bounds = array<i64: 1, 8, 128>}, {transform_indices = @transform_1, window_bounds = array<i64: 1, 1, 128>}, {pipeline_mode = #tpu.pipeline_mode<synchronous>, transform_indices = @transform_2, window_bounds = array<i64: 128, 128>}, {pipeline_mode = #tpu.pipeline_mode<synchronous>, transform_indices = @transform_3, window_bounds = array<i64: 1, 128>}, {transform_indices = @transform_4, window_bounds = array<i64: 1, 128, 128>}, {transform_indices = @transform_5, window_bounds = array<i64: 8, 128>}]} {
    %c0_i32 = arith.constant 0 : i32
    %0 = arith.cmpi eq, %arg1, %c0_i32 : i32
    %1 = arith.extui %0 : i1 to i32
    %c0_i32_0 = arith.constant 0 : i32
    %2 = arith.cmpi ne, %1, %c0_i32_0 : i32
    scf.if %2 {
      %cst_18 = arith.constant 0.000000e+00 : f32
      %25 = vector.broadcast %cst_18 : f32 to vector<8x128xf32>
      %c0_19 = arith.constant 0 : index
      %c0_20 = arith.constant 0 : index
      %26 = vector.load %arg7[%c0_19, %c0_20] : memref<8x128xf32, #tpu.memory_space<vmem>>, vector<8x128xf32>
      tpu.vector_store %arg7[%c0_19, %c0_20], %25 {strides = array<i32>} : memref<8x128xf32, #tpu.memory_space<vmem>>, vector<8x128xf32>,
    } else {
    }
    %c0 = arith.constant 0 : index
    %c0_1 = arith.constant 0 : index
    %c0_2 = arith.constant 0 : index
    %3 = vector.load %arg2[%c0, %c0_1, %c0_2] : memref<1x8x128xf32, #tpu.memory_space<vmem>>, vector<1x8x128xf32>
    %4 = vector.shape_cast %3 : vector<1x8x128xf32> to vector<8x128xf32>
    %c0_3 = arith.constant 0 : index
    %c0_4 = arith.constant 0 : index
    %c0_5 = arith.constant 0 : index
    %5 = vector.load %arg3[%c0_3, %c0_4, %c0_5] : memref<1x1x128xf32, #tpu.memory_space<vmem>>, vector<1x1x128xf32>
    %6 = vector.shape_cast %5 : vector<1x1x128xf32> to vector<1x128xf32>
    %7 = vector.broadcast %6 : vector<1x128xf32> to vector<8x128xf32>
    %8 = arith.cmpf ogt, %4, %7 : vector<8x128xf32>
    %9 = arith.extui %8 : vector<8x128xi1> to vector<8x128xi32>
    %10 = arith.sitofp %9 : vector<8x128xi32> to vector<8x128xf32>
    %11 = arith.truncf %10 : vector<8x128xf32> to vector<8x128xbf16>
    %c0_6 = arith.constant 0 : index
    %c0_7 = arith.constant 0 : index
    %12 = vector.load %arg4[%c0_6, %c0_7] : memref<128x128xbf16, #tpu.memory_space<vmem>>, vector<128x128xbf16>
    %cst = arith.constant dense<0.000000e+00> : vector<8x128xf32>
    %13 = tpu.matmul %11, %12, %cst {dimension_numbers = #tpu.dot_dimension_numbers<[1], [0], [0], [1], [0, 0, 1, 1], [], []>} : vector<8x128xbf16>, vector<128x128xbf16>, vector<8x128xf32> -> vector<8x128xf32>
    %c0_8 = arith.constant 0 : index
    %c0_9 = arith.constant 0 : index
    %14 = vector.load %arg5[%c0_8, %c0_9] : memref<1x128xf32, #tpu.memory_space<vmem>>, vector<1x128xf32>
    %15 = vector.broadcast %14 : vector<1x128xf32> to vector<8x128xf32>
    %16 = arith.cmpf ogt, %13, %15 : vector<8x128xf32>
    %17 = arith.extui %16 : vector<8x128xi1> to vector<8x128xi32>
    %18 = arith.sitofp %17 : vector<8x128xi32> to vector<8x128xf32>
    %c0_10 = arith.constant 0 : index
    %c0_11 = arith.constant 0 : index
    %19 = vector.load %arg7[%c0_10, %c0_11] : memref<8x128xf32, #tpu.memory_space<vmem>>, vector<8x128xf32>
    %c0_12 = arith.constant 0 : index
    %c0_13 = arith.constant 0 : index
    %c0_14 = arith.constant 0 : index
    %20 = vector.load %arg6[%c0_12, %c0_13, %c0_14] : memref<1x128x128xf32, #tpu.memory_space<vmem>>, vector<1x128x128xf32>
    %21 = vector.shape_cast %20 : vector<1x128x128xf32> to vector<128x128xf32>
    %cst_15 = arith.constant dense<0.000000e+00> : vector<8x128xf32>
    %22 = tpu.matmul %18, %21, %cst_15 {dimension_numbers = #tpu.dot_dimension_numbers<[1], [0], [0], [1], [0, 0, 1, 1], [], []>} : vector<8x128xf32>, vector<128x128xf32>, vector<8x128xf32> -> vector<8x128xf32>
    %23 = arith.addf %19, %22 : vector<8x128xf32>
    %c0_16 = arith.constant 0 : index
    %c0_17 = arith.constant 0 : index
    %24 = vector.load %arg7[%c0_16, %c0_17] : memref<8x128xf32, #tpu.memory_space<vmem>>, vector<8x128xf32>
    tpu.vector_store %arg7[%c0_16, %c0_17], %23 {strides = array<i32>} : memref<8x128xf32, #tpu.memory_space<vmem>>, vector<8x128xf32>,
    return
  }
  func.func @transform_0(%arg0: i32, %arg1: i32) -> (i32, i32, i32) {
    %c0_i32 = arith.constant 0 : i32
    %c0_i32_0 = arith.constant 0 : i32
    return %arg1, %arg0, %c0_i32 : i32, i32, i32
  }
  func.func @transform_1(%arg0: i32, %arg1: i32) -> (i32, i32, i32) {
    %c0_i32 = arith.constant 0 : i32
    %c0_i32_0 = arith.constant 0 : i32
    %c0_i32_1 = arith.constant 0 : i32
    return %arg1, %c0_i32, %c0_i32_0 : i32, i32, i32
  }
  func.func @transform_2(%arg0: i32, %arg1: i32) -> (i32, i32) {
    %c0_i32 = arith.constant 0 : i32
    %c0_i32_0 = arith.constant 0 : i32
    %c0_i32_1 = arith.constant 0 : i32
    return %c0_i32, %c0_i32_0 : i32, i32
  }
  func.func @transform_3(%arg0: i32, %arg1: i32) -> (i32, i32) {
    %c0_i32 = arith.constant 0 : i32
    %c0_i32_0 = arith.constant 0 : i32
    %c0_i32_1 = arith.constant 0 : i32
    return %c0_i32, %c0_i32_0 : i32, i32
  }
  func.func @transform_4(%arg0: i32, %arg1: i32) -> (i32, i32, i32) {
    %c0_i32 = arith.constant 0 : i32
    %c0_i32_0 = arith.constant 0 : i32
    %c0_i32_1 = arith.constant 0 : i32
    return %arg1, %c0_i32, %c0_i32_0 : i32, i32, i32
  }
  func.func @transform_5(%arg0: i32, %arg1: i32) -> (i32, i32) {
    %c0_i32 = arith.constant 0 : i32
    %c0_i32_0 = arith.constant 0 : i32
    return %arg0, %c0_i32 : i32, i32
  }
}

</mosaic_0001>

<bundles_post_ra>
// kernel: tpu_custom_call.1
= control target key start
LH: loop header
LB: loop body
LE: loop exit
PB: predicated region body
PF: predicated region fallthrough
CT: control target
= control target key end

     0   :  { %10 = vsyncpa [#allocation3], 0  ;;  %s1381_s0 = inlined_call_operand.hbm [shape: f32[1,16,128], index: 0, kind: input, shape index: {}]   ;;  %s1382_s1 = inlined_call_operand.vmem [shape: f32[1,1,128], index: 1, kind: input, shape index: {}]   ;;  %s1383_s2 = inlined_call_operand.hbm [shape: bf16[128,128], index: 2, kind: input, shape index: {}]   ;;  %s1384_s3 = inlined_call_operand.vmem [shape: f32[1,128], index: 3, kind: input, shape index: {}]   ;;  %s1385_s4 = inlined_call_operand.hbm [shape: f32[1,128,128], index: 4, kind: input, shape index: {}]   ;;  %s1386_s5 = inlined_call_operand.hbm [shape: f32[16,128], index: 5, kind: output, shape index: {}]  }
   0x1   :  { %12 = vsyncpa [#allocation3 + $0x1], 0 }
   0x2   :  { %13 = vsyncpa [#allocation6], 0 }
   0x3   :  { %14 = vsyncpa [#allocation4], 0 }
   0x4   :  { %16 = vsyncpa [#allocation4 + $0x1], 0  ;;  %s1110_s18 = smov 0   ;;  %s1112_s19 = smov 0  }
   0x5   :  { %s1114_s20 = smov 0   ;;  %s1116_s21 = smov 0  }
   0x6   :  { %s1118_s22 = smov 0   ;;  %s1120_s23 = smov 0  }
   0x7 LB: > { %s655_s24 = sadd.s32 4294967295, %s1065_s23   ;;  %s656_s25 = sadd.s32 4294967294, %s1065_s23   ;;  %s1065_s23 = sphi %s1120_s23, %s22_s23   ;;  %s1061_s22 = sphi %s1118_s22, %s1408_s22   ;;  %s1057_s21 = sphi %s1116_s21, %s1407_s21   ;;  %s1053_s20 = sphi %s1114_s20, %s1406_s20   ;;  %s1049_s19 = sphi %s1112_s19, %s1405_s19   ;;  %s1045_s18 = sphi %s1110_s18, %s1404_s18  }
   0x8   : > { %p56_p0 = scmp.ne.s32.totalorder %s1049_s19, %s1045_s18  ;;  %p1144_p1 = scmp.eq.s32.totalorder %s655_s24, 0 }
   0x9   : > { %p1148_p2 = scmp.eq.s32.totalorder %s655_s24, 1  ;;  %p180_p3 = scmp.eq.s32.totalorder %s656_s25, 1 }
   0xa   : > { %s1391_s26 = scalar_select %p1144_p1, 1, 0 }
   0xb   : > { %p1154_p4 = por %p1144_p1, %p56_p0  ;;  %p657_p5 = scmp.ge.s32.totalorder %s1065_s23, 1 }
   0xc   : > { %p1159_p6 = por %p180_p3, %p56_p0  ;;  %p187_p7 = scmp.lt.s32.totalorder %s1065_s23, 3 }
   0xd   : > { %s1393_s28 = scalar_select %p1154_p4, 1, 0 }
   0xe   : > { %s1394_s29 = scalar_select %p1159_p6, 1, 0 }
   0xf   : > { %p1164_p8 = pnand %p657_p5, %p187_p7  ;;  %s1067_s6 = smov [#allocation5]  }
  0x10   : > { %s205_s7 = sshll.u32 %s1067_s6, 4  ;;  %s1068_s9 = smov [#allocation7]   ;;  %s1168_s7 = int_to_ptr.vmem [resolvable:$true] %s205_s7 }
  0x11   : > { %p805_p9 = pneg %p1164_p8  ;;  %s224_s10 = sshll.u32 %s1068_s9, 4  ;;  %s1179_s10 = int_to_ptr.vmem [resolvable:$true] %s224_s10 }
  0x12   : > { %s893_s13 = scalar_lea.hbm %s1383_s2, 1024 }
  0x13   : > { %p1175_p11 = pnand %p805_p9, %p1144_p1  ;;  %p894_p12 = scmp.ne.s32.totalorder %s1383_s2, %s893_s13 }
  0x14   : > { %p900_p5 = scmp.lt.u32.totalorder %s893_s13, %s1383_s2 }
  0x15   : > { %p895_p13 = pneg %p1175_p11 }
  0x17   : > { %p896_p0 = pnand %p895_p13, %p894_p12 }
  0x19   : > { %p897_p3 = pneg %p896_p0 }
  0x1b   : > { %p902_p7 = pnand %p900_p5, %p897_p3 }
  0x1d   : > { %905 = shalt.err (!%p902_p7)
}
  0x1e   : > { %s906_s24 = scalar_lea.vmem %s1168_s7, 1024  ;;  %p914_p1 = scmp.lt.s32.totalorder %s1168_s7, %s1168_s7 }
  0x1f   : > { %p907_p9 = scmp.ne.s32.totalorder %s1168_s7, %s906_s24  ;;  %p915_p12 = scmp.lt.s32.totalorder %s906_s24, %s906_s24 }
  0x21   : > { %p909_p10 = pnand %p907_p9, %p895_p13  ;;  %p916_p0 = por %p915_p12, %p914_p1 }
  0x23   : > { %p910_p6 = pneg %p909_p10 }
  0x25   : > { %p917_p4 = pnand %p916_p0, %p910_p6 }
  0x27   : > { %920 = shalt.err (!%p917_p4)
}
  0x28   : > { %s1069_s25 = smov 64   ;;  %s1070_s6 = smov 4  }
  0x29   : > { %808 = dma.hbm_to_vmem [thread:$0]  (!%p1175_p11), %s1383_s2, 1024, %s1168_s7, [#allocation6], %s1069_s25, %s1069_s25, %s1070_s6  }
  0x2a   : > { %s921_s14 = scalar_lea.hbm %s1385_s4, 2048 }
  0x2b   : > { %p922_p1 = scmp.ne.s32.totalorder %s1385_s4, %s921_s14  ;;  %p928_p10 = scmp.lt.u32.totalorder %s921_s14, %s1385_s4 }
  0x2d   : > { %p924_p4 = pnand %p922_p1, %p895_p13 }
  0x2f   : > { %p925_p6 = pneg %p924_p4 }
  0x31   : > { %p930_p3 = pnand %p928_p10, %p925_p6 }
  0x33   : > { %933 = shalt.err (!%p930_p3)
}
  0x34   : > { %s934_s7 = scalar_lea.vmem %s1179_s10, 2048  ;;  %p942_p12 = scmp.lt.s32.totalorder %s1179_s10, %s1179_s10 }
  0x35   : > { %p935_p5 = scmp.ne.s32.totalorder %s1179_s10, %s934_s7  ;;  %p943_p0 = scmp.lt.s32.totalorder %s934_s7, %s934_s7 }
  0x37   : > { %p937_p7 = pnand %p935_p5, %p895_p13  ;;  %p944_p1 = por %p943_p0, %p942_p12 }
  0x39   : > { %p938_p9 = pneg %p937_p7 }
  0x3b   : > { %p945_p4 = pnand %p944_p1, %p938_p9 }
  0x3d   : > { %948 = shalt.err (!%p945_p4)
}
  0x3e   : > { %s1071_s25 = smov 128   ;;  %s1072_s6 = smov 8  }
  0x3f   : > { %811 = dma.hbm_to_vmem [thread:$0]  (!%p1175_p11), %s1385_s4, 2048, %s1179_s10, [#allocation6], %s1071_s25, %s1071_s25, %s1072_s6  }
  0x40   : > { %s34_s12 = sadd.s32 1, %s1061_s22  ;;  %s43_s13 = sadd.s32 1, %s1053_s20 }
  0x41   : > { %p36_p13 = scmp.ge.s32.totalorder %s34_s12, 2  ;;  %p50_p6 = scmp.ne.s32.totalorder %s1053_s20, %s1049_s19 }
  0x42   : > { %p51_p10 = scmp.eq.s32.totalorder %s1065_s23, 0  ;;  %p822_p3 = scmp.lt.s32.totalorder %s1065_s23, 2 }
  0x43   : > { %s1410_s12 = smov (%p36_p13, %s34_s12), 0  ;;  %p1243_p7 = por %p1148_p2, %p50_p6 }
  0x44   : > { %p52_p5 = por %p51_p10, %p50_p6  ;;  %s39_s8 = ssub.s32 %s1061_s22, %s1410_s12 }
  0x45   : > { %s1397_s14 = scalar_select %p1243_p7, 1, 0 }
  0x46   : > { %s238_s15 = sand.u32 1, %s1053_s20   ;;  %p41_p9 = scmp.eq.s32.totalorder %s39_s8, 0 }
  0x47   : > { %s662_s10 = sshll.u32 %s238_s15, 3  ;;  %s663_s16 = sshll.u32 %s1061_s22, 7 }
  0x48   : > { %s1252_s17 = scalar_select %p41_p9, %s1053_s20, %s43_s13  }
  0x49   : > { %s1257_s25 = scalar_lea.hbm %s1381_s0, %s663_s16  ;;  %s242_s27 = scalar_lea.vmem [#allocation2], %s662_s10 }
  0x4a   : > { %s251_s6 = sshll.u32 %s242_s27, 4  ;;  %p1261_p2 = pnand %p822_p3, %p52_p5  ;;  %s1265_s6 = int_to_ptr.vmem [resolvable:$true] %s251_s6 }
  0x4b   : > { %s239_s11 = scalar_lea.sflag [#allocation3], %s238_s15  ;;  %s949_s13 = scalar_lea.hbm %s1257_s25, 128 }
  0x4c   : > { %p950_p11 = scmp.ne.s32.totalorder %s1257_s25, %s949_s13  ;;  %p951_p12 = pneg %p1261_p2 }
  0x4d   : > { %s954_s16 = scalar_lea.hbm %s1381_s0, 256  ;;  %p955_p4 = scmp.lt.u32.totalorder %s1257_s25, %s1381_s0 }
  0x4e   : > { %p952_p0 = pnand %p951_p12, %p950_p11  ;;  %p956_p13 = scmp.lt.u32.totalorder %s954_s16, %s949_s13 }
  0x4f   : > { %p958_p10 = scmp.lt.u32.totalorder %s949_s13, %s1257_s25 }
  0x50   : > { %p953_p1 = pneg %p952_p0  ;;  %p957_p6 = por %p956_p13, %p955_p4 }
  0x52   : > { %p959_p3 = por %p958_p10, %p957_p6 }
  0x54   : > { %p960_p5 = pnand %p959_p3, %p953_p1 }
  0x56   : > { %963 = shalt.err (!%p960_p5)
}
  0x57   : > { %s964_s15 = scalar_lea.vmem %s1265_s6, 128  ;;  %s1073_s27 = smov [#allocation2]  }
  0x58   : > { %p965_p9 = scmp.ne.s32.totalorder %s1265_s6, %s964_s15  ;;  %s969_s8 = sshll.u32 %s1073_s27, 4  ;;  %s970_s8 = int_to_ptr.vmem [resolvable:$false] %s969_s8 }
  0x59   : > { %s971_s10 = scalar_lea.vmem %s970_s8, 256  ;;  %p972_p7 = scmp.lt.s32.totalorder %s1265_s6, %s970_s8 }
  0x5a   : > { %p967_p11 = pnand %p965_p9, %p951_p12  ;;  %p973_p4 = scmp.lt.s32.totalorder %s971_s10, %s964_s15 }
  0x5c   : > { %p968_p0 = pneg %p967_p11  ;;  %p974_p13 = por %p973_p4, %p972_p7 }
  0x5e   : > { %p975_p6 = pnand %p974_p13, %p968_p0 }
  0x60   : > { %978 = shalt.err (!%p975_p6)
}
  0x61   : > { %815 = dma.hbm_to_vmem [thread:$0]  (!%p1261_p2), %s1257_s25, 128, %s1265_s6, %s239_s11  }
  0x62   : > { %260 = sbr.rel (%p1164_p8) target bundleno = 582 (0x246), region = 40  ;;  %s1295_s13 = sand.u32 (!%p1164_p8), 1, %s1049_s19  }
  0x63   : > { %s665_s16 = sshll.u32 (!%p1164_p8), %s1295_s13, 3  ;;  %s263_s24 = scalar_lea.sflag (!%p1164_p8), [#allocation3], %s1295_s13 }
  0x64   : > { %s1301_s7 = scalar_lea.vmem (!%p1164_p8), [#allocation2], %s665_s16  ;;  %p1399_p7 = scmp.ne.s32.totalorder (!%p1164_p8), %s1393_s28, 0 }
  0x69   : > { %1032 = dma.done.wait (%p1399_p7), %s263_s24, 128  }
  0x6a   : > { %1034 = vsyncadd (%p1399_p7), %s263_s24, 4294967168  ;;  %p1400_p2 = scmp.ne.s32.totalorder %s1391_s26, 0 }
  0x6c   : > { %1036 = dma.done.wait (%p1400_p2), [#allocation6], 3072  }
  0x6d   : > { %1038 = vsyncadd (%p1400_p2), [#allocation6], 4294964224  ;;  %v1074_v0 = vmov 0.0   ;;  %vm1075_vm0 = vmmov 0   ;;  %v1076_v1 = vmov 0.0|0.0   ;;  %v885_v2 = vld [vmem:[#allocation5] sm:$0xff]  }
  0x6e   : > { %714 = vmatprep.subr.bf16.mxu0 %v1074_v0  ;;  %730 = vmatprep.mubr.msk.bf16.mxu0 %vm1075_vm0, %v1074_v0  ;;  %v886_v3 = vld [vmem:[#allocation5 + $0x8] sm:$0xff]   ;;  %v887_v4 = vld [vmem:[#allocation5 + $0x10] sm:$0xff]   ;;  %v440_v5 = vld [vmem:[#allocation7] sm:$0xff]  ;;  %v1077_v33 = vmov 1.0|1.0   ;;  %v1078_v41 = vmov 1.0  }
  0x6f   : > { %769 = vmatprep.subr.bf16.mxu1 %v1076_v1  ;;  %766 = vmatprep.mubr.msk.f32.mxu1 %vm1075_vm0, %v1074_v0  ;;  %v441_v6 = vld [vmem:[#allocation7 + $0x8] sm:$0xff]  ;;  %v442_v7 = vld [vmem:[#allocation7 + $0x10] sm:$0xff]  ;;  %v443_v8 = vld [vmem:[#allocation7 + $0x18] sm:$0xff]  ;;  %s685_s6 = sshll.u32 %s1057_s21, 7  ;;  %s303_s9 = scalar_lea.vmem [#allocation8], %s665_s16 }
  0x70   : > { %715 = vmatpush3.bf16.msra.mxu0 %v885_v2  ;;  %v888_v9 = vld [vmem:[#allocation5 + $0x18] sm:$0xff]   ;;  %v770_v10 = vpack.c.bf16 %v441_v6, %v440_v5  ;;  %v773_v11 = vpack.c.bf16 %v443_v8, %v442_v7  ;;  %v444_v12 = vld [vmem:[#allocation7 + $0x20] sm:$0xff]  ;;  %v445_v13 = vld [vmem:[#allocation7 + $0x28] sm:$0xff]  ;;  %s542_s11 = sshll.u32 %s303_s9, 4  ;;  %s1332_s8 = scalar_lea.hbm %s1386_s5, %s685_s6  ;;  %s1334_s11 = int_to_ptr.vmem [resolvable:$true] %s542_s11 }
  0x71   : > { %716 = vmatprep.subr.bf16.mxu0 %v1074_v0  ;;  %v889_v14 = vld [vmem:[#allocation5 + $0x20] sm:$0xff]   ;;  %v776_v15 = vpack.c.bf16 %v445_v13, %v444_v12  ;;  %v446_v16 = vld [vmem:[#allocation7 + $0x30] sm:$0xff]  ;;  %v447_v17 = vld [vmem:[#allocation7 + $0x38] sm:$0xff]  ;;  %s529_s10 = scalar_lea.sflag [#allocation4], %s1295_s13  ;;  %s979_s24 = scalar_lea.vmem %s1334_s11, 128 }
  0x72   : > { %771 = vmatpush3.bf16.msra.mxu1 %v770_v10  ;;  %v890_v18 = vld [vmem:[#allocation5 + $0x28] sm:$0xff]   ;;  %v779_v19 = vpack.c.bf16 %v447_v17, %v446_v16  ;;  %v448_v20 = vld [vmem:[#allocation7 + $0x40] sm:$0xff]  ;;  %v891_v22 = vld [vmem:[#allocation5 + $0x30] sm:$0xff]   ;;  %p980_p8 = scmp.ne.s32.totalorder %s1334_s11, %s979_s24  ;;  %p1401_p12 = scmp.ne.s32.totalorder %s1397_s14, 0 }
  0x73   : > { %772 = vmatprep.subr.bf16.mxu1 %v1076_v1  ;;  %v449_v21 = vld [vmem:[#allocation7 + $0x48] sm:$0xff]  ;;  %v313_v23 = vld [vmem:[%s1301_s7] sm:$0xff]  ;;  %v452_v30 = vld [vmem:[#allocation7 + $0x60] sm:$0xff]  ;;  %s1079_s21 = smov [#allocation8]  }
  0x74   : > { %717 = vmatpush3.bf16.msra.mxu0 %v886_v3  ;;  %v669_v24 = vld [vmem:[%s1382_s1] ss:$0 sm:$0xff]  ;;  %v782_v25 = vpack.c.bf16 %v449_v21, %v448_v20  ;;  %v451_v27 = vld [vmem:[#allocation7 + $0x58] sm:$0xff]  ;;  %v453_v31 = vld [vmem:[#allocation7 + $0x68] sm:$0xff]  ;;  %p981_p1 = pnand %p980_p8, %p1401_p12  ;;  %s983_s16 = sshll.u32 %s1079_s21, 4  ;;  %s984_s16 = int_to_ptr.vmem [resolvable:$false] %s983_s16 }
  0x75   : > { %718 = vmatprep.subr.bf16.mxu0 %v1074_v0  ;;  %v450_v26 = vld [vmem:[#allocation7 + $0x50] sm:$0xff]  ;;  %v892_v28 = vld [vmem:[#allocation5 + $0x38] sm:$0xff]   ;;  %vm321_vm1 = vcmp.gt.f32.partialorder %v313_v23, %v669_v24  ;;  %v788_v32 = vpack.c.bf16 %v453_v31, %v452_v30  ;;  %s985_s7 = scalar_lea.vmem %s984_s16, 256  ;;  %p986_p3 = scmp.lt.s32.totalorder %s1334_s11, %s984_s16 }
  0x76   : > { %774 = vmatpush3.bf16.msra.mxu1 %v773_v11  ;;  %v785_v29 = vpack.c.bf16 %v451_v27, %v450_v26  ;;  %vm679_vm2 = vmpackc.low %vm321_vm1, %vm321_vm1  ;;  %v454_v34 = vld [vmem:[#allocation7 + $0x70] sm:$0xff]  ;;  %v455_v35 = vld [vmem:[#allocation7 + $0x78] sm:$0xff]  ;;  %p982_p10 = pneg %p981_p1  ;;  %p987_p5 = scmp.lt.s32.totalorder %s985_s7, %s979_s24 }
  0x77   : > { %775 = vmatprep.subr.bf16.mxu1 %v1076_v1  ;;  %v791_v36 = vpack.c.bf16 %v455_v35, %v454_v34  ;;  %v681_v37 = vld [vmem:[%s1384_s3] ss:$0 sm:$0xff] }
  0x78   : > { %719 = vmatpush3.bf16.msra.mxu0 %v887_v4  ;;  %p988_p9 = por %p987_p5, %p986_p3 }
  0x79   : > { %720 = vmatprep.subr.bf16.mxu0 %v1074_v0 }
  0x7a   : > { %777 = vmatpush3.bf16.msra.mxu1 %v776_v15  ;;  %p989_p11 = pnand %p988_p9, %p982_p10 }
  0x7b   : > { %778 = vmatprep.subr.bf16.mxu1 %v1076_v1 }
  0x7c   : > { %721 = vmatpush3.bf16.msra.mxu0 %v888_v9 }
  0x7d   : > { %722 = vmatprep.subr.bf16.mxu0 %v1074_v0 }
  0x7e   : > { %780 = vmatpush3.bf16.msra.mxu1 %v779_v19 }
  0x7f   : > { %781 = vmatprep.subr.bf16.mxu1 %v1076_v1 }
  0x80   : > { %723 = vmatpush3.bf16.msra.mxu0 %v889_v14 }
  0x81   : > { %724 = vmatprep.subr.bf16.mxu0 %v1074_v0 }
  0x82   : > { %783 = vmatpush3.bf16.msra.mxu1 %v782_v25 }
  0x83   : > { %784 = vmatprep.subr.bf16.mxu1 %v1076_v1 }
  0x84   : > { %725 = vmatpush3.bf16.msra.mxu0 %v890_v18 }
  0x85   : > { %726 = vmatprep.subr.bf16.mxu0 %v1074_v0 }
  0x86   : > { %786 = vmatpush3.bf16.msra.mxu1 %v785_v29 }
  0x87   : > { %787 = vmatprep.subr.bf16.mxu1 %v1076_v1 }
  0x88   : > { %727 = vmatpush3.bf16.msra.mxu0 %v891_v22 }
  0x89   : > { %728 = vmatprep.subr.bf16.mxu0 %v1074_v0 }
  0x8a   : > { %789 = vmatpush3.bf16.msra.mxu1 %v788_v32 }
  0x8b   : > { %790 = vmatprep.subr.bf16.mxu1 %v1076_v1 }
  0x8c   : > { %729 = vmatpush3.bf16.msra.mxu0 %v892_v28 }
  0x8e   : > { %792 = vmatpush3.bf16.msra.mxu1 %v791_v36 }
  0x8f   : > { %731 = vmatmul.mubr.msk.bf16.vlgmr.msra.gmra.mrb[0].mxu0 %vm679_vm2, %v1077_v33 }
 0x162   : > { %v423_v38 = vpop.f32.mrb[0].mxu0 }
 0x163   : > { %vm436_vm3 = vcmp.gt.f32.partialorder %v423_v38, %v681_v37  ;;  %v732_v39 = vpop.f32.mrb[1].mxu0 }
 0x164   : > { %v426_v40 = vpop.f32.mrb[2].mxu0  ;;  %767 = vmatmul.mubr.msk.f32.vlgmr.msra.gmra.mrb[0].mxu1 %vm436_vm3, %v1078_v41 }
 0x165   : > { %v733_v42 = vpop.f32.mrb[3].mxu0 }
 0x237   : > { %v522_v43 = vpop.f32.mrb[0].mxu1 }
 0x238   : > { %v768_v44 = vpop.f32.mrb[1].mxu1  ;;  %527 = vst [vmem:[%s303_s9] sm:$0xff] %v522_v43 }
 0x239   : > { %992 = shalt.err (!%p989_p11)
}
 0x23a   : > { %s993_s13 = scalar_lea.hbm %s1332_s8, 128  ;;  %s997_s30 = scalar_lea.hbm %s1386_s5, 256 }
 0x23b   : > { %p994_p0 = scmp.ne.s32.totalorder %s1332_s8, %s993_s13  ;;  %p998_p6 = scmp.lt.u32.totalorder %s1332_s8, %s1386_s5 }
 0x23c   : > { %p999_p7 = scmp.lt.u32.totalorder %s997_s30, %s993_s13  ;;  %p1001_p8 = scmp.lt.u32.totalorder %s993_s13, %s1332_s8 }
 0x23d   : > { %p995_p4 = pnand %p994_p0, %p1401_p12 }
 0x23e   : > { %p1000_p2 = por %p999_p7, %p998_p6 }
 0x23f   : > { %p996_p13 = pneg %p995_p4 }
 0x240   : > { %p1002_p1 = por %p1001_p8, %p1000_p2 }
 0x242   : > { %p1003_p10 = pnand %p1002_p1, %p996_p13 }
 0x244   : > { %1006 = shalt.err (!%p1003_p10)
}
 0x245   : > { %803 = dma.vmem_to_hbm [thread:$0]  (%p1401_p12), %s1334_s11, 128, %s1332_s8, %s529_s10  }
 0x246 PF: > { %s554_s9 = sand.u32 1, %s1045_s18   ;;  %p1402_p3 = scmp.ne.s32.totalorder %s1394_s29, 0 }
 0x247   : > { %p1403_p5 = scmp.ge.s32.totalorder %s1065_s23, 2  ;;  %s555_s15 = scalar_lea.sflag [#allocation4], %s554_s9 }
 0x249   : > { %p817_p9 = pnand %p1403_p5, %p1402_p3 }
 0x24b   : > { %1040 = dma.done.wait (!%p817_p9), %s555_s15, 128  }
 0x24c   : > { %1042 = vsyncadd (!%p817_p9), %s555_s15, 4294967168  ;;  %s22_s23 = sadd.s32 1, %s1065_s23   ;;  %s1404_s18 = smov %s1049_s19 }
 0x24d   : > { %p19_p11 = scmp.ge.s32.totalorder %s22_s23, 4   ;;  %s1405_s19 = smov %s1053_s20 }
 0x24e   : > { %s1406_s20 = smov %s1252_s17  ;;  %s1407_s21 = smov %s1061_s22 }
 0x24f   : > { %s1408_s22 = smov %s1410_s12  ;;  %21 = sbr.rel (!%p19_p11) target bundleno = 7 (0x7), region = 101 }
 0x256   :  { %560 = vsyncpa [#allocation3], 1 }
 0x257   :  { %562 = vsyncpa [#allocation3 + $0x1], 1 }
 0x258   :  { %563 = vsyncpa [#allocation6], 1 }
 0x259   :  { %564 = vsyncpa [#allocation4], 1 }
 0x25a   :  { %566 = vsyncpa [#allocation4 + $0x1], 1 }

// kernel: tpu_custom_call.1
= control target key start
LH: loop header
LB: loop body
LE: loop exit
PB: predicated region body
PF: predicated region fallthrough
CT: control target
= control target key end

     0   :  { %10 = vsyncpa [#allocation3], 0  ;;  %s1381_s0 = inlined_call_operand.hbm [shape: f32[1,16,128], index: 0, kind: input, shape index: {}]   ;;  %s1382_s1 = inlined_call_operand.vmem [shape: f32[1,1,128], index: 1, kind: input, shape index: {}]   ;;  %s1383_s2 = inlined_call_operand.hbm [shape: bf16[128,128], index: 2, kind: input, shape index: {}]   ;;  %s1384_s3 = inlined_call_operand.vmem [shape: f32[1,128], index: 3, kind: input, shape index: {}]   ;;  %s1385_s4 = inlined_call_operand.hbm [shape: f32[1,128,128], index: 4, kind: input, shape index: {}]   ;;  %s1386_s5 = inlined_call_operand.hbm [shape: f32[16,128], index: 5, kind: output, shape index: {}]  }
   0x1   :  { %12 = vsyncpa [#allocation3 + $0x1], 0 }
   0x2   :  { %13 = vsyncpa [#allocation6], 0 }
   0x3   :  { %14 = vsyncpa [#allocation4], 0 }
   0x4   :  { %16 = vsyncpa [#allocation4 + $0x1], 0  ;;  %s1110_s18 = smov 0   ;;  %s1112_s19 = smov 0  }
   0x5   :  { %s1114_s20 = smov 0   ;;  %s1116_s21 = smov 0  }
   0x6   :  { %s1118_s22 = smov 0   ;;  %s1120_s23 = smov 0  }
   0x7 LB: > { %s655_s24 = sadd.s32 4294967295, %s1065_s23   ;;  %s656_s25 = sadd.s32 4294967294, %s1065_s23   ;;  %s1065_s23 = sphi %s1120_s23, %s22_s23   ;;  %s1061_s22 = sphi %s1118_s22, %s1408_s22   ;;  %s1057_s21 = sphi %s1116_s21, %s1407_s21   ;;  %s1053_s20 = sphi %s1114_s20, %s1406_s20   ;;  %s1049_s19 = sphi %s1112_s19, %s1405_s19   ;;  %s1045_s18 = sphi %s1110_s18, %s1404_s18  }
   0x8   : > { %p56_p0 = scmp.ne.s32.totalorder %s1049_s19, %s1045_s18  ;;  %p1144_p1 = scmp.eq.s32.totalorder %s655_s24, 0 }
   0x9   : > { %p1148_p2 = scmp.eq.s32.totalorder %s655_s24, 1  ;;  %p180_p3 = scmp.eq.s32.totalorder %s656_s25, 1 }
   0xa   : > { %s1391_s26 = scalar_select %p1144_p1, 1, 0 }
   0xb   : > { %p1154_p4 = por %p1144_p1, %p56_p0  ;;  %p657_p5 = scmp.ge.s32.totalorder %s1065_s23, 1 }
   0xc   : > { %p1159_p6 = por %p180_p3, %p56_p0  ;;  %p187_p7 = scmp.lt.s32.totalorder %s1065_s23, 3 }
   0xd   : > { %s1393_s28 = scalar_select %p1154_p4, 1, 0 }
   0xe   : > { %s1394_s29 = scalar_select %p1159_p6, 1, 0 }
   0xf   : > { %p1164_p8 = pnand %p657_p5, %p187_p7  ;;  %s1067_s6 = smov [#allocation5]  }
  0x10   : > { %s205_s7 = sshll.u32 %s1067_s6, 4  ;;  %s1068_s9 = smov [#allocation7]   ;;  %s1168_s7 = int_to_ptr.vmem [resolvable:$true] %s205_s7 }
  0x11   : > { %p805_p9 = pneg %p1164_p8  ;;  %s224_s10 = sshll.u32 %s1068_s9, 4  ;;  %s1179_s10 = int_to_ptr.vmem [resolvable:$true] %s224_s10 }
  0x12   : > { %s893_s13 = scalar_lea.hbm %s1383_s2, 1024 }
  0x13   : > { %p1175_p11 = pnand %p805_p9, %p1144_p1  ;;  %p894_p12 = scmp.ne.s32.totalorder %s1383_s2, %s893_s13 }
  0x14   : > { %p900_p5 = scmp.lt.u32.totalorder %s893_s13, %s1383_s2 }
  0x15   : > { %p895_p13 = pneg %p1175_p11 }
  0x17   : > { %p896_p0 = pnand %p895_p13, %p894_p12 }
  0x19   : > { %p897_p3 = pneg %p896_p0 }
  0x1b   : > { %p902_p7 = pnand %p900_p5, %p897_p3 }
  0x1d   : > { %905 = shalt.err (!%p902_p7)
}
  0x1e   : > { %s906_s24 = scalar_lea.vmem %s1168_s7, 1024  ;;  %p914_p1 = scmp.lt.s32.totalorder %s1168_s7, %s1168_s7 }
  0x1f   : > { %p907_p9 = scmp.ne.s32.totalorder %s1168_s7, %s906_s24  ;;  %p915_p12 = scmp.lt.s32.totalorder %s906_s24, %s906_s24 }
  0x21   : > { %p909_p10 = pnand %p907_p9, %p895_p13  ;;  %p916_p0 = por %p915_p12, %p914_p1 }
  0x23   : > { %p910_p6 = pneg %p909_p10 }
  0x25   : > { %p917_p4 = pnand %p916_p0, %p910_p6 }
  0x27   : > { %920 = shalt.err (!%p917_p4)
}
  0x28   : > { %s1069_s25 = smov 64   ;;  %s1070_s6 = smov 4  }
  0x29   : > { %808 = dma.hbm_to_vmem [thread:$0]  (!%p1175_p11), %s1383_s2, 1024, %s1168_s7, [#allocation6], %s1069_s25, %s1069_s25, %s1070_s6  }
  0x2a   : > { %s921_s14 = scalar_lea.hbm %s1385_s4, 2048 }
  0x2b   : > { %p922_p1 = scmp.ne.s32.totalorder %s1385_s4, %s921_s14  ;;  %p928_p10 = scmp.lt.u32.totalorder %s921_s14, %s1385_s4 }
  0x2d   : > { %p924_p4 = pnand %p922_p1, %p895_p13 }
  0x2f   : > { %p925_p6 = pneg %p924_p4 }
  0x31   : > { %p930_p3 = pnand %p928_p10, %p925_p6 }
  0x33   : > { %933 = shalt.err (!%p930_p3)
}
  0x34   : > { %s934_s7 = scalar_lea.vmem %s1179_s10, 2048  ;;  %p942_p12 = scmp.lt.s32.totalorder %s1179_s10, %s1179_s10 }
  0x35   : > { %p935_p5 = scmp.ne.s32.totalorder %s1179_s10, %s934_s7  ;;  %p943_p0 = scmp.lt.s32.totalorder %s934_s7, %s934_s7 }
  0x37   : > { %p937_p7 = pnand %p935_p5, %p895_p13  ;;  %p944_p1 = por %p943_p0, %p942_p12 }
  0x39   : > { %p938_p9 = pneg %p937_p7 }
  0x3b   : > { %p945_p4 = pnand %p944_p1, %p938_p9 }
  0x3d   : > { %948 = shalt.err (!%p945_p4)
}
  0x3e   : > { %s1071_s25 = smov 128   ;;  %s1072_s6 = smov 8  }
  0x3f   : > { %811 = dma.hbm_to_vmem [thread:$0]  (!%p1175_p11), %s1385_s4, 2048, %s1179_s10, [#allocation6], %s1071_s25, %s1071_s25, %s1072_s6  }
  0x40   : > { %s34_s12 = sadd.s32 1, %s1061_s22  ;;  %s43_s13 = sadd.s32 1, %s1053_s20 }
  0x41   : > { %p36_p13 = scmp.ge.s32.totalorder %s34_s12, 2  ;;  %p50_p6 = scmp.ne.s32.totalorder %s1053_s20, %s1049_s19 }
  0x42   : > { %p51_p10 = scmp.eq.s32.totalorder %s1065_s23, 0  ;;  %p822_p3 = scmp.lt.s32.totalorder %s1065_s23, 2 }
  0x43   : > { %s1410_s12 = smov (%p36_p13, %s34_s12), 0  ;;  %p1243_p7 = por %p1148_p2, %p50_p6 }
  0x44   : > { %p52_p5 = por %p51_p10, %p50_p6  ;;  %s39_s8 = ssub.s32 %s1061_s22, %s1410_s12 }
  0x45   : > { %s1397_s14 = scalar_select %p1243_p7, 1, 0 }
  0x46   : > { %s238_s15 = sand.u32 1, %s1053_s20   ;;  %p41_p9 = scmp.eq.s32.totalorder %s39_s8, 0 }
  0x47   : > { %s662_s10 = sshll.u32 %s238_s15, 3  ;;  %s663_s16 = sshll.u32 %s1061_s22, 7 }
  0x48   : > { %s1252_s17 = scalar_select %p41_p9, %s1053_s20, %s43_s13  }
  0x49   : > { %s1257_s25 = scalar_lea.hbm %s1381_s0, %s663_s16  ;;  %s242_s27 = scalar_lea.vmem [#allocation2], %s662_s10 }
  0x4a   : > { %s251_s6 = sshll.u32 %s242_s27, 4  ;;  %p1261_p2 = pnand %p822_p3, %p52_p5  ;;  %s1265_s6 = int_to_ptr.vmem [resolvable:$true] %s251_s6 }
  0x4b   : > { %s239_s11 = scalar_lea.sflag [#allocation3], %s238_s15  ;;  %s949_s13 = scalar_lea.hbm %s1257_s25, 128 }
  0x4c   : > { %p950_p11 = scmp.ne.s32.totalorder %s1257_s25, %s949_s13  ;;  %p951_p12 = pneg %p1261_p2 }
  0x4d   : > { %s954_s16 = scalar_lea.hbm %s1381_s0, 256  ;;  %p955_p4 = scmp.lt.u32.totalorder %s1257_s25, %s1381_s0 }
  0x4e   : > { %p952_p0 = pnand %p951_p12, %p950_p11  ;;  %p956_p13 = scmp.lt.u32.totalorder %s954_s16, %s949_s13 }
  0x4f   : > { %p958_p10 = scmp.lt.u32.totalorder %s949_s13, %s1257_s25 }
  0x50   : > { %p953_p1 = pneg %p952_p0  ;;  %p957_p6 = por %p956_p13, %p955_p4 }
  0x52   : > { %p959_p3 = por %p958_p10, %p957_p6 }
  0x54   : > { %p960_p5 = pnand %p959_p3, %p953_p1 }
  0x56   : > { %963 = shalt.err (!%p960_p5)
}
  0x57   : > { %s964_s15 = scalar_lea.vmem %s1265_s6, 128  ;;  %s1073_s27 = smov [#allocation2]  }
  0x58   : > { %p965_p9 = scmp.ne.s32.totalorder %s1265_s6, %s964_s15  ;;  %s969_s8 = sshll.u32 %s1073_s27, 4  ;;  %s970_s8 = int_to_ptr.vmem [resolvable:$false] %s969_s8 }
  0x59   : > { %s971_s10 = scalar_lea.vmem %s970_s8, 256  ;;  %p972_p7 = scmp.lt.s32.totalorder %s1265_s6, %s970_s8 }
  0x5a   : > { %p967_p11 = pnand %p965_p9, %p951_p12  ;;  %p973_p4 = scmp.lt.s32.totalorder %s971_s10, %s964_s15 }
  0x5c   : > { %p968_p0 = pneg %p967_p11  ;;  %p974_p13 = por %p973_p4, %p972_p7 }
  0x5e   : > { %p975_p6 = pnand %p974_p13, %p968_p0 }
  0x60   : > { %978 = shalt.err (!%p975_p6)
}
  0x61   : > { %815 = dma.hbm_to_vmem [thread:$0]  (!%p1261_p2), %s1257_s25, 128, %s1265_s6, %s239_s11  }
  0x62   : > { %260 = sbr.rel (%p1164_p8) target bundleno = 582 (0x246), region = 40  ;;  %s1295_s13 = sand.u32 (!%p1164_p8), 1, %s1049_s19  }
  0x63   : > { %s665_s16 = sshll.u32 (!%p1164_p8), %s1295_s13, 3  ;;  %s263_s24 = scalar_lea.sflag (!%p1164_p8), [#allocation3], %s1295_s13 }
  0x64   : > { %s1301_s7 = scalar_lea.vmem (!%p1164_p8), [#allocation2], %s665_s16  ;;  %p1399_p7 = scmp.ne.s32.totalorder (!%p1164_p8), %s1393_s28, 0 }
  0x69   : > { %1032 = dma.done.wait (%p1399_p7), %s263_s24, 128  }
  0x6a   : > { %1034 = vsyncadd (%p1399_p7), %s263_s24, 4294967168  ;;  %p1400_p2 = scmp.ne.s32.totalorder %s1391_s26, 0 }
  0x6c   : > { %1036 = dma.done.wait (%p1400_p2), [#allocation6], 3072  }
  0x6d   : > { %1038 = vsyncadd (%p1400_p2), [#allocation6], 4294964224  ;;  %v1074_v0 = vmov 0.0   ;;  %vm1075_vm0 = vmmov 0   ;;  %v1076_v1 = vmov 0.0|0.0   ;;  %v885_v2 = vld [vmem:[#allocation5] sm:$0xff]  }
  0x6e   : > { %714 = vmatprep.subr.bf16.mxu0 %v1074_v0  ;;  %730 = vmatprep.mubr.msk.bf16.mxu0 %vm1075_vm0, %v1074_v0  ;;  %v886_v3 = vld [vmem:[#allocation5 + $0x8] sm:$0xff]   ;;  %v887_v4 = vld [vmem:[#allocation5 + $0x10] sm:$0xff]   ;;  %v440_v5 = vld [vmem:[#allocation7] sm:$0xff]  ;;  %v1077_v33 = vmov 1.0|1.0   ;;  %v1078_v41 = vmov 1.0  }
  0x6f   : > { %769 = vmatprep.subr.bf16.mxu1 %v1076_v1  ;;  %766 = vmatprep.mubr.msk.f32.mxu1 %vm1075_vm0, %v1074_v0  ;;  %v441_v6 = vld [vmem:[#allocation7 + $0x8] sm:$0xff]  ;;  %v442_v7 = vld [vmem:[#allocation7 + $0x10] sm:$0xff]  ;;  %v443_v8 = vld [vmem:[#allocation7 + $0x18] sm:$0xff]  ;;  %s685_s6 = sshll.u32 %s1057_s21, 7  ;;  %s303_s9 = scalar_lea.vmem [#allocation8], %s665_s16 }
  0x70   : > { %715 = vmatpush3.bf16.msra.mxu0 %v885_v2  ;;  %v888_v9 = vld [vmem:[#allocation5 + $0x18] sm:$0xff]   ;;  %v770_v10 = vpack.c.bf16 %v441_v6, %v440_v5  ;;  %v773_v11 = vpack.c.bf16 %v443_v8, %v442_v7  ;;  %v444_v12 = vld [vmem:[#allocation7 + $0x20] sm:$0xff]  ;;  %v445_v13 = vld [vmem:[#allocation7 + $0x28] sm:$0xff]  ;;  %s542_s11 = sshll.u32 %s303_s9, 4  ;;  %s1332_s8 = scalar_lea.hbm %s1386_s5, %s685_s6  ;;  %s1334_s11 = int_to_ptr.vmem [resolvable:$true] %s542_s11 }
  0x71   : > { %716 = vmatprep.subr.bf16.mxu0 %v1074_v0  ;;  %v889_v14 = vld [vmem:[#allocation5 + $0x20] sm:$0xff]   ;;  %v776_v15 = vpack.c.bf16 %v445_v13, %v444_v12  ;;  %v446_v16 = vld [vmem:[#allocation7 + $0x30] sm:$0xff]  ;;  %v447_v17 = vld [vmem:[#allocation7 + $0x38] sm:$0xff]  ;;  %s529_s10 = scalar_lea.sflag [#allocation4], %s1295_s13  ;;  %s979_s24 = scalar_lea.vmem %s1334_s11, 128 }
  0x72   : > { %771 = vmatpush3.bf16.msra.mxu1 %v770_v10  ;;  %v890_v18 = vld [vmem:[#allocation5 + $0x28] sm:$0xff]   ;;  %v779_v19 = vpack.c.bf16 %v447_v17, %v446_v16  ;;  %v448_v20 = vld [vmem:[#allocation7 + $0x40] sm:$0xff]  ;;  %v891_v22 = vld [vmem:[#allocation5 + $0x30] sm:$0xff]   ;;  %p980_p8 = scmp.ne.s32.totalorder %s1334_s11, %s979_s24  ;;  %p1401_p12 = scmp.ne.s32.totalorder %s1397_s14, 0 }
  0x73   : > { %772 = vmatprep.subr.bf16.mxu1 %v1076_v1  ;;  %v449_v21 = vld [vmem:[#allocation7 + $0x48] sm:$0xff]  ;;  %v313_v23 = vld [vmem:[%s1301_s7] sm:$0xff]  ;;  %v452_v30 = vld [vmem:[#allocation7 + $0x60] sm:$0xff]  ;;  %s1079_s21 = smov [#allocation8]  }
  0x74   : > { %717 = vmatpush3.bf16.msra.mxu0 %v886_v3  ;;  %v669_v24 = vld [vmem:[%s1382_s1] ss:$0 sm:$0xff]  ;;  %v782_v25 = vpack.c.bf16 %v449_v21, %v448_v20  ;;  %v451_v27 = vld [vmem:[#allocation7 + $0x58] sm:$0xff]  ;;  %v453_v31 = vld [vmem:[#allocation7 + $0x68] sm:$0xff]  ;;  %p981_p1 = pnand %p980_p8, %p1401_p12  ;;  %s983_s16 = sshll.u32 %s1079_s21, 4  ;;  %s984_s16 = int_to_ptr.vmem [resolvable:$false] %s983_s16 }
  0x75   : > { %718 = vmatprep.subr.bf16.mxu0 %v1074_v0  ;;  %v450_v26 = vld [vmem:[#allocation7 + $0x50] sm:$0xff]  ;;  %v892_v28 = vld [vmem:[#allocation5 + $0x38] sm:$0xff]   ;;  %vm321_vm1 = vcmp.gt.f32.partialorder %v313_v23, %v669_v24  ;;  %v788_v32 = vpack.c.bf16 %v453_v31, %v452_v30  ;;  %s985_s7 = scalar_lea.vmem %s984_s16, 256  ;;  %p986_p3 = scmp.lt.s32.totalorder %s1334_s11, %s984_s16 }
  0x76   : > { %774 = vmatpush3.bf16.msra.mxu1 %v773_v11  ;;  %v785_v29 = vpack.c.bf16 %v451_v27, %v450_v26  ;;  %vm679_vm2 = vmpackc.low %vm321_vm1, %vm321_vm1  ;;  %v454_v34 = vld [vmem:[#allocation7 + $0x70] sm:$0xff]  ;;  %v455_v35 = vld [vmem:[#allocation7 + $0x78] sm:$0xff]  ;;  %p982_p10 = pneg %p981_p1  ;;  %p987_p5 = scmp.lt.s32.totalorder %s985_s7, %s979_s24 }
  0x77   : > { %775 = vmatprep.subr.bf16.mxu1 %v1076_v1  ;;  %v791_v36 = vpack.c.bf16 %v455_v35, %v454_v34  ;;  %v681_v37 = vld [vmem:[%s1384_s3] ss:$0 sm:$0xff] }
  0x78   : > { %719 = vmatpush3.bf16.msra.mxu0 %v887_v4  ;;  %p988_p9 = por %p987_p5, %p986_p3 }
  0x79   : > { %720 = vmatprep.subr.bf16.mxu0 %v1074_v0 }
  0x7a   : > { %777 = vmatpush3.bf16.msra.mxu1 %v776_v15  ;;  %p989_p11 = pnand %p988_p9, %p982_p10 }
  0x7b   : > { %778 = vmatprep.subr.bf16.mxu1 %v1076_v1 }
  0x7c   : > { %721 = vmatpush3.bf16.msra.mxu0 %v888_v9 }
  0x7d   : > { %722 = vmatprep.subr.bf16.mxu0 %v1074_v0 }
  0x7e   : > { %780 = vmatpush3.bf16.msra.mxu1 %v779_v19 }
  0x7f   : > { %781 = vmatprep.subr.bf16.mxu1 %v1076_v1 }
  0x80   : > { %723 = vmatpush3.bf16.msra.mxu0 %v889_v14 }
  0x81   : > { %724 = vmatprep.subr.bf16.mxu0 %v1074_v0 }
  0x82   : > { %783 = vmatpush3.bf16.msra.mxu1 %v782_v25 }
  0x83   : > { %784 = vmatprep.subr.bf16.mxu1 %v1076_v1 }
  0x84   : > { %725 = vmatpush3.bf16.msra.mxu0 %v890_v18 }
  0x85   : > { %726 = vmatprep.subr.bf16.mxu0 %v1074_v0 }
  0x86   : > { %786 = vmatpush3.bf16.msra.mxu1 %v785_v29 }
  0x87   : > { %787 = vmatprep.subr.bf16.mxu1 %v1076_v1 }
  0x88   : > { %727 = vmatpush3.bf16.msra.mxu0 %v891_v22 }
  0x89   : > { %728 = vmatprep.subr.bf16.mxu0 %v1074_v0 }
  0x8a   : > { %789 = vmatpush3.bf16.msra.mxu1 %v788_v32 }
  0x8b   : > { %790 = vmatprep.subr.bf16.mxu1 %v1076_v1 }
  0x8c   : > { %729 = vmatpush3.bf16.msra.mxu0 %v892_v28 }
  0x8e   : > { %792 = vmatpush3.bf16.msra.mxu1 %v791_v36 }
  0x8f   : > { %731 = vmatmul.mubr.msk.bf16.vlgmr.msra.gmra.mrb[0].mxu0 %vm679_vm2, %v1077_v33 }
 0x162   : > { %v423_v38 = vpop.f32.mrb[0].mxu0 }
 0x163   : > { %vm436_vm3 = vcmp.gt.f32.partialorder %v423_v38, %v681_v37  ;;  %v732_v39 = vpop.f32.mrb[1].mxu0 }
 0x164   : > { %v426_v40 = vpop.f32.mrb[2].mxu0  ;;  %767 = vmatmul.mubr.msk.f32.vlgmr.msra.gmra.mrb[0].mxu1 %vm436_vm3, %v1078_v41 }
 0x165   : > { %v733_v42 = vpop.f32.mrb[3].mxu0 }
 0x237   : > { %v522_v43 = vpop.f32.mrb[0].mxu1 }
 0x238   : > { %v768_v44 = vpop.f32.mrb[1].mxu1  ;;  %527 = vst [vmem:[%s303_s9] sm:$0xff] %v522_v43 }
 0x239   : > { %992 = shalt.err (!%p989_p11)
}
 0x23a   : > { %s993_s13 = scalar_lea.hbm %s1332_s8, 128  ;;  %s997_s30 = scalar_lea.hbm %s1386_s5, 256 }
 0x23b   : > { %p994_p0 = scmp.ne.s32.totalorder %s1332_s8, %s993_s13  ;;  %p998_p6 = scmp.lt.u32.totalorder %s1332_s8, %s1386_s5 }
 0x23c   : > { %p999_p7 = scmp.lt.u32.totalorder %s997_s30, %s993_s13  ;;  %p1001_p8 = scmp.lt.u32.totalorder %s993_s13, %s1332_s8 }
 0x23d   : > { %p995_p4 = pnand %p994_p0, %p1401_p12 }
 0x23e   : > { %p1000_p2 = por %p999_p7, %p998_p6 }
 0x23f   : > { %p996_p13 = pneg %p995_p4 }
 0x240   : > { %p1002_p1 = por %p1001_p8, %p1000_p2 }
 0x242   : > { %p1003_p10 = pnand %p1002_p1, %p996_p13 }
 0x244   : > { %1006 = shalt.err (!%p1003_p10)
}
 0x245   : > { %803 = dma.vmem_to_hbm [thread:$0]  (%p1401_p12), %s1334_s11, 128, %s1332_s8, %s529_s10  }
 0x246 PF: > { %s554_s9 = sand.u32 1, %s1045_s18   ;;  %p1402_p3 = scmp.ne.s32.totalorder %s1394_s29, 0 }
 0x247   : > { %p1403_p5 = scmp.ge.s32.totalorder %s1065_s23, 2  ;;  %s555_s15 = scalar_lea.sflag [#allocation4], %s554_s9 }
 0x249   : > { %p817_p9 = pnand %p1403_p5, %p1402_p3 }
 0x24b   : > { %1040 = dma.done.wait (!%p817_p9), %s555_s15, 128  }
 0x24c   : > { %1042 = vsyncadd (!%p817_p9), %s555_s15, 4294967168  ;;  %s22_s23 = sadd.s32 1, %s1065_s23   ;;  %s1404_s18 = smov %s1049_s19 }
 0x24d   : > { %p19_p11 = scmp.ge.s32.totalorder %s22_s23, 4   ;;  %s1405_s19 = smov %s1053_s20 }
 0x24e   : > { %s1406_s20 = smov %s1252_s17  ;;  %s1407_s21 = smov %s1061_s22 }
 0x24f   : > { %s1408_s22 = smov %s1410_s12  ;;  %21 = sbr.rel (!%p19_p11) target bundleno = 7 (0x7), region = 101 }
 0x256   :  { %560 = vsyncpa [#allocation3], 1 }
 0x257   :  { %562 = vsyncpa [#allocation3 + $0x1], 1 }
 0x258   :  { %563 = vsyncpa [#allocation6], 1 }
 0x259   :  { %564 = vsyncpa [#allocation4], 1 }
 0x25a   :  { %566 = vsyncpa [#allocation4 + $0x1], 1 }

</bundles_post_ra>
